<compile_context>
chip_gen: v7x
topology: tpu7x:2x2x1
jax: 0.10.0
libtpu: 0.0.40
codegen_flags: <defaults>
</compile_context>

<pallas_src>
import jax
import jax.numpy as jnp
from jax.experimental import pallas as pl
from jax.experimental.pallas import tpu as pltpu


def _discriminator_kernel(x_ref, w1_ref, b1_ref, w2_ref, b2_ref, w3_ref, b3_ref, o_ref):
    # x_ref: (TM, H)   w1: (H, HL)  b1: (1, HL)
    # w2: (HL, HL)     b2: (1, HL)
    # w3: (1, HL)      b3: (1, 1)   o_ref: (1, TM)   (lane-dense per-row outputs)
    x = jnp.maximum(x_ref[...], 0.0)                                     # relu(input)
    h1 = jnp.dot(x, w1_ref[...], preferred_element_type=jnp.float32) + b1_ref[...]
    h1 = jnp.maximum(h1, 0.0)                                            # relu(hid(.))
    h2 = jnp.dot(h1, w2_ref[...], preferred_element_type=jnp.float32) + b2_ref[...]
    h2 = jnp.maximum(h2, 0.0)                                            # relu(hid2(.))
    # Final layer: contract feature axis of h2 (TM, HL) with w3 (1, HL); result is (1, TM)
    # so the per-row logits are already lane-dense for an unmasked store.
    logits = jax.lax.dot_general(
        w3_ref[...], h2,
        dimension_numbers=(((1,), (1,)), ((), ())),
        preferred_element_type=jnp.float32,
    ) + b3_ref[...]
    o_ref[...] = jax.nn.sigmoid(logits)                                  # sigmoid(out(.))


def discriminator_forward(x, params, *, tile_m=512):
    """x: (batch, seq, hidden_size) float32 -> (batch, seq) (trailing size-1 dim squeezed)."""
    w1, b1, w2, b2, w3, b3 = params
    B, S, H = x.shape
    HL = w1.shape[1]
    M = B * S

    # Row tile: keep it a multiple of 128 (lane-dense output / MXU friendly), but don't
    # over-pad tiny inputs. For v7x keep M large enough that grid >= 2 so both TCs work.
    tile_m = min(tile_m, ((M + 127) // 128) * 128)
    tile_m = max(128, (tile_m // 128) * 128)
    num_tiles = pl.cdiv(M, tile_m)
    m_pad = num_tiles * tile_m

    x2d = x.reshape(M, H)
    if m_pad != M:
        x2d = jnp.pad(x2d, ((0, m_pad - M), (0, 0)))  # zero rows: harmless, discarded below

    out = pl.pallas_call(
        _discriminator_kernel,
        out_shape=jax.ShapeDtypeStruct((num_tiles, tile_m), jnp.float32),
        grid_spec=pltpu.PrefetchScalarGridSpec(
            num_scalar_prefetch=0,
            grid=(num_tiles,),
            in_specs=[
                pl.BlockSpec((tile_m, H), lambda i: (i, 0)),   # x rows (streamed)
                pl.BlockSpec((H, HL), lambda i: (0, 0)),       # hid.weight^T   (resident)
                pl.BlockSpec((1, HL), lambda i: (0, 0)),       # hid.bias       (resident)
                pl.BlockSpec((HL, HL), lambda i: (0, 0)),      # hid2.weight^T  (resident)
                pl.BlockSpec((1, HL), lambda i: (0, 0)),       # hid2.bias      (resident)
                pl.BlockSpec((1, HL), lambda i: (0, 0)),       # out.weight     (resident)
                pl.BlockSpec((1, 1), lambda i: (0, 0)),        # out.bias       (resident)
            ],
            out_specs=pl.BlockSpec((1, tile_m), lambda i: (i, 0)),  # lane-dense output row
        ),
        compiler_params=pltpu.CompilerParams(
            dimension_semantics=("parallel",),
        ),
    )(x2d, w1, b1, w2, b2, w3, b3)

    # torch .squeeze(): drop the trailing size-1 output dim -> (batch, seq)
    return out.reshape(m_pad)[:M].reshape(B, S)


def init_params(key, hidden_size, hidden_layer_size):
    """Deterministic init mimicking torch.nn.Linear default (uniform +-1/sqrt(fan_in)).
    w1/w2 stored transposed (in_features, out_features); w3 stored as (1, in_features)."""
    k1, k2, k3, k4, k5, k6 = jax.random.split(key, 6)

    def u(k, shape, fan_in):
        bound = 1.0 / jnp.sqrt(fan_in)
        return jax.random.uniform(k, shape, jnp.float32, -bound, bound)

    w1 = u(k1, (hidden_size, hidden_layer_size), hidden_size)
    b1 = u(k2, (1, hidden_layer_size), hidden_size)
    w2 = u(k3, (hidden_layer_size, hidden_layer_size), hidden_layer_size)
    b2 = u(k4, (1, hidden_layer_size), hidden_layer_size)
    w3 = u(k5, (1, hidden_layer_size), hidden_layer_size)
    b3 = u(k6, (1, 1), hidden_layer_size)
    return (w1, b1, w2, b2, w3, b3)


def _reference_forward(x, params):
    """Pure-JAX reference reproducing the PyTorch forward semantics."""
    w1, b1, w2, b2, w3, b3 = params
    h = jnp.maximum(x, 0.0)
    h = jnp.maximum(h @ w1 + b1[0], 0.0)
    h = jnp.maximum(h @ w2 + b2[0], 0.0)
    logits = h @ w3[0] + b3[0, 0]
    return jax.nn.sigmoid(logits)


if __name__ == "__main__":
    hidden_size = 32
    hidden_layer_size = 32
    batch, seq = 2, 8

    key = jax.random.PRNGKey(0)
    k_x, k_p = jax.random.split(key)
    x = jax.random.normal(k_x, (batch, seq, hidden_size), jnp.float32)
    params = init_params(k_p, hidden_size, hidden_layer_size)

    out = discriminator_forward(x, params)
    out = jax.block_until_ready(out)

    ref = _reference_forward(x, params)
    assert out.shape == (batch, seq), f"bad shape {out.shape}"
    assert jnp.allclose(out, ref, atol=1e-5, rtol=1e-5), "mismatch vs reference"

    print("KERNEL_OK")
</pallas_src>

<mosaic_0001>
module attributes {stable_mosaic.version = 11 : i64} {
  func.func @_discriminator_kernel(%arg0: i32, %arg1: memref<128x32xf32, #tpu.memory_space<vmem>>, %arg2: memref<32x32xf32, #tpu.memory_space<vmem>>, %arg3: memref<1x32xf32, #tpu.memory_space<vmem>>, %arg4: memref<32x32xf32, #tpu.memory_space<vmem>>, %arg5: memref<1x32xf32, #tpu.memory_space<vmem>>, %arg6: memref<1x32xf32, #tpu.memory_space<vmem>>, %arg7: memref<1x1xf32, #tpu.memory_space<vmem>>, %arg8: memref<1x128xf32, #tpu.memory_space<vmem>>) attributes {dimension_semantics = [#tpu.dimension_semantics<parallel>], iteration_bounds = array<i64: 1>, scalar_prefetch = 0 : i64, scratch_operands = 0 : i64, tpu.core_type = #tpu.core_type<tc>, window_params = [{transform_indices = @transform_0, window_bounds = array<i64: 128, 32>}, {pipeline_mode = #tpu.pipeline_mode<synchronous>, transform_indices = @transform_1, window_bounds = array<i64: 32, 32>}, {pipeline_mode = #tpu.pipeline_mode<synchronous>, transform_indices = @transform_2, window_bounds = array<i64: 1, 32>}, {pipeline_mode = #tpu.pipeline_mode<synchronous>, transform_indices = @transform_3, window_bounds = array<i64: 32, 32>}, {pipeline_mode = #tpu.pipeline_mode<synchronous>, transform_indices = @transform_4, window_bounds = array<i64: 1, 32>}, {pipeline_mode = #tpu.pipeline_mode<synchronous>, transform_indices = @transform_5, window_bounds = array<i64: 1, 32>}, {pipeline_mode = #tpu.pipeline_mode<synchronous>, transform_indices = @transform_6, window_bounds = array<i64: 1, 1>}, {transform_indices = @transform_7, window_bounds = array<i64: 1, 128>}]} {
    %c0 = arith.constant 0 : index
    %c0_0 = arith.constant 0 : index
    %0 = vector.load %arg1[%c0, %c0_0] : memref<128x32xf32, #tpu.memory_space<vmem>>, vector<128x32xf32>
    %cst = arith.constant 0.000000e+00 : f32
    %1 = vector.broadcast %cst : f32 to vector<128x32xf32>
    %2 = arith.maximumf %0, %1 : vector<128x32xf32>
    %c0_1 = arith.constant 0 : index
    %c0_2 = arith.constant 0 : index
    %3 = vector.load %arg2[%c0_1, %c0_2] : memref<32x32xf32, #tpu.memory_space<vmem>>, vector<32x32xf32>
    %cst_3 = arith.constant dense<0.000000e+00> : vector<128x32xf32>
    %4 = tpu.matmul %2, %3, %cst_3 {dimension_numbers = #tpu.dot_dimension_numbers<[1], [0], [0], [1], [0, 0, 1, 1], [], []>} : vector<128x32xf32>, vector<32x32xf32>, vector<128x32xf32> -> vector<128x32xf32>
    %c0_4 = arith.constant 0 : index
    %c0_5 = arith.constant 0 : index
    %5 = vector.load %arg3[%c0_4, %c0_5] : memref<1x32xf32, #tpu.memory_space<vmem>>, vector<1x32xf32>
    %6 = vector.broadcast %5 : vector<1x32xf32> to vector<128x32xf32>
    %7 = arith.addf %4, %6 : vector<128x32xf32>
    %cst_6 = arith.constant 0.000000e+00 : f32
    %8 = vector.broadcast %cst_6 : f32 to vector<128x32xf32>
    %9 = arith.maximumf %7, %8 : vector<128x32xf32>
    %c0_7 = arith.constant 0 : index
    %c0_8 = arith.constant 0 : index
    %10 = vector.load %arg4[%c0_7, %c0_8] : memref<32x32xf32, #tpu.memory_space<vmem>>, vector<32x32xf32>
    %cst_9 = arith.constant dense<0.000000e+00> : vector<128x32xf32>
    %11 = tpu.matmul %9, %10, %cst_9 {dimension_numbers = #tpu.dot_dimension_numbers<[1], [0], [0], [1], [0, 0, 1, 1], [], []>} : vector<128x32xf32>, vector<32x32xf32>, vector<128x32xf32> -> vector<128x32xf32>
    %c0_10 = arith.constant 0 : index
    %c0_11 = arith.constant 0 : index
    %12 = vector.load %arg5[%c0_10, %c0_11] : memref<1x32xf32, #tpu.memory_space<vmem>>, vector<1x32xf32>
    %13 = vector.broadcast %12 : vector<1x32xf32> to vector<128x32xf32>
    %14 = arith.addf %11, %13 : vector<128x32xf32>
    %cst_12 = arith.constant 0.000000e+00 : f32
    %15 = vector.broadcast %cst_12 : f32 to vector<128x32xf32>
    %16 = arith.maximumf %14, %15 : vector<128x32xf32>
    %c0_13 = arith.constant 0 : index
    %c0_14 = arith.constant 0 : index
    %17 = vector.load %arg6[%c0_13, %c0_14] : memref<1x32xf32, #tpu.memory_space<vmem>>, vector<1x32xf32>
    %cst_15 = arith.constant dense<0.000000e+00> : vector<1x128xf32>
    %18 = tpu.matmul %17, %16, %cst_15 {dimension_numbers = #tpu.dot_dimension_numbers<[1], [1], [0], [0], [0, 0, 1, 0], [], []>} : vector<1x32xf32>, vector<128x32xf32>, vector<1x128xf32> -> vector<1x128xf32>
    %c0_16 = arith.constant 0 : index
    %c0_17 = arith.constant 0 : index
    %19 = vector.load %arg7[%c0_16, %c0_17] : memref<1x1xf32, #tpu.memory_space<vmem>>, vector<1x1xf32>
    %20 = vector.broadcast %19 : vector<1x1xf32> to vector<1x128xf32>
    %21 = arith.addf %18, %20 : vector<1x128xf32>
    %22 = arith.negf %21 : vector<1x128xf32>
    %23 = math.exp %22 : vector<1x128xf32>
    %cst_18 = arith.constant 1.000000e+00 : f32
    %24 = vector.broadcast %cst_18 : f32 to vector<1x128xf32>
    %25 = arith.addf %24, %23 : vector<1x128xf32>
    %26 = arith.divf %24, %25 : vector<1x128xf32>
    %c0_19 = arith.constant 0 : index
    %c0_20 = arith.constant 0 : index
    %27 = vector.load %arg8[%c0_19, %c0_20] : memref<1x128xf32, #tpu.memory_space<vmem>>, vector<1x128xf32>
    tpu.vector_store %arg8[%c0_19, %c0_20], %26 {strides = array<i32>} : memref<1x128xf32, #tpu.memory_space<vmem>>, vector<1x128xf32>,
    return
  }
  func.func @transform_0(%arg0: i32) -> (i32, i32) {
    %c0_i32 = arith.constant 0 : i32
    %c0_i32_0 = arith.constant 0 : i32
    return %arg0, %c0_i32 : i32, i32
  }
  func.func @transform_1(%arg0: i32) -> (i32, i32) {
    %c0_i32 = arith.constant 0 : i32
    %c0_i32_0 = arith.constant 0 : i32
    %c0_i32_1 = arith.constant 0 : i32
    return %c0_i32, %c0_i32_0 : i32, i32
  }
  func.func @transform_2(%arg0: i32) -> (i32, i32) {
    %c0_i32 = arith.constant 0 : i32
    %c0_i32_0 = arith.constant 0 : i32
    %c0_i32_1 = arith.constant 0 : i32
    return %c0_i32, %c0_i32_0 : i32, i32
  }
  func.func @transform_3(%arg0: i32) -> (i32, i32) {
    %c0_i32 = arith.constant 0 : i32
    %c0_i32_0 = arith.constant 0 : i32
    %c0_i32_1 = arith.constant 0 : i32
    return %c0_i32, %c0_i32_0 : i32, i32
  }
  func.func @transform_4(%arg0: i32) -> (i32, i32) {
    %c0_i32 = arith.constant 0 : i32
    %c0_i32_0 = arith.constant 0 : i32
    %c0_i32_1 = arith.constant 0 : i32
    return %c0_i32, %c0_i32_0 : i32, i32
  }
  func.func @transform_5(%arg0: i32) -> (i32, i32) {
    %c0_i32 = arith.constant 0 : i32
    %c0_i32_0 = arith.constant 0 : i32
    %c0_i32_1 = arith.constant 0 : i32
    return %c0_i32, %c0_i32_0 : i32, i32
  }
  func.func @transform_6(%arg0: i32) -> (i32, i32) {
    %c0_i32 = arith.constant 0 : i32
    %c0_i32_0 = arith.constant 0 : i32
    %c0_i32_1 = arith.constant 0 : i32
    return %c0_i32, %c0_i32_0 : i32, i32
  }
  func.func @transform_7(%arg0: i32) -> (i32, i32) {
    %c0_i32 = arith.constant 0 : i32
    %c0_i32_0 = arith.constant 0 : i32
    return %arg0, %c0_i32 : i32, i32
  }
}

</mosaic_0001>

<bundles_post_ra>
// kernel: tpu_custom_call.1
= control target key start
LH: loop header
LB: loop body
LE: loop exit
PB: predicated region body
PF: predicated region fallthrough
CT: control target
= control target key end

     0   :  { %s1149_s0 = inlined_call_operand.vmem [shape: f32[128,32], index: 0, kind: input, shape index: {}]   ;;  %s1150_s1 = inlined_call_operand.vmem [shape: f32[32,32], index: 1, kind: input, shape index: {}]   ;;  %s1151_s2 = inlined_call_operand.vmem [shape: f32[1,32], index: 2, kind: input, shape index: {}]   ;;  %s1152_s3 = inlined_call_operand.vmem [shape: f32[32,32], index: 3, kind: input, shape index: {}]   ;;  %s1153_s4 = inlined_call_operand.vmem [shape: f32[1,32], index: 4, kind: input, shape index: {}]   ;;  %s1154_s5 = inlined_call_operand.vmem [shape: f32[1,32], index: 5, kind: input, shape index: {}]   ;;  %s1155_s6 = inlined_call_operand.<no memory space> [shape: f32[1,1], index: 6, kind: input, shape index: {}]   ;;  %s1156_s7 = inlined_call_operand.hbm [shape: f32[1,128], index: 7, kind: output, shape index: {}]  }
   0x1   :  { %v12_v0 = vstv %s1155_s6 }
   0x2   :  { %13 = vst [vmem:[#allocation2] sm:$0x1] %v12_v0 }
   0x3   :  { %v61_v1 = vld [vmem:[%s1150_s1] sm:$0xff]  ;;  %v62_v2 = vld [vmem:[%s1150_s1 + $0x8] sm:$0xff]  ;;  %v63_v3 = vld [vmem:[%s1150_s1 + $0x10] sm:$0xff]  ;;  %vm72_vm0 = vcmask 261120  }
   0x4   :  { %v863_v4 = vpack.c.bf16 %v62_v2, %v61_v1  ;;  %v64_v5 = vld [vmem:[%s1150_s1 + $0x18] sm:$0xff]  ;;  %v29_v6 = vld [vmem:[%s1149_s0] sm:$0xff]  ;;  %v30_v9 = vld [vmem:[%s1149_s0 + $0x8] sm:$0xff] }
   0x5   :  { %v867_v7 = vpack.c.bf16 %v64_v5, %v63_v3  ;;  %v45_v8 = vmax.f32 %v29_v6, 0.0  ;;  %v31_v10 = vld [vmem:[%s1149_s0 + $0x10] sm:$0xff]  ;;  %v282_v11 = vld [vmem:[%s1152_s3] sm:$0xff]  ;;  %v46_v12 = vmax.f32 %v30_v9, 0.0  ;;  %v283_v13 = vld [vmem:[%s1152_s3 + $0x8] sm:$0xff] }
   0x6   :  { %864 = vmatprep.subr.bf16.mxu1 %v863_v4  ;;  %v284_v14 = vld [vmem:[%s1152_s3 + $0x10] sm:$0xff]  ;;  %v285_v15 = vld [vmem:[%s1152_s3 + $0x18] sm:$0xff]  ;;  %v47_v16 = vmax.f32 %v31_v10, 0.0  ;;  %v871_v18 = vpack.c.bf16 %v283_v13, %v282_v11 }
   0x7   :  { %866 = vmatpush3.bf16.msra.mxu1 %v863_v4  ;;  %772 = vmatprep.mubr.msk.f32.mxu1 %vm72_vm0, %v45_v8  ;;  %v32_v17 = vld [vmem:[%s1149_s0 + $0x18] sm:$0xff] }
   0x8   :  { %868 = vmatprep.subr.bf16.mxu1 %v867_v7 }
   0xb   :  { %870 = vmatpush3.bf16.msra.mxu1 %v867_v7 }
   0xc   :  { %14 = vsyncpa [#allocation4], 0  ;;  %v33_v19 = vld [vmem:[%s1149_s0 + $0x20] sm:$0xff]  ;;  %v875_v20 = vpack.c.bf16 %v285_v15, %v284_v14  ;;  %872 = vmatprep.subr.bf16.mxu1 %v871_v18  ;;  %v48_v21 = vmax.f32 %v32_v17, 0.0  ;;  %v34_v23 = vld [vmem:[%s1149_s0 + $0x28] sm:$0xff]  ;;  %vm946_vm1 = vmmov 0  }
   0xd   :  { %v49_v22 = vmax.f32 %v33_v19, 0.0  ;;  %v35_v24 = vld [vmem:[%s1149_s0 + $0x30] sm:$0xff]  ;;  %v50_v25 = vmax.f32 %v34_v23, 0.0  ;;  %v36_v27 = vld [vmem:[%s1149_s0 + $0x38] sm:$0xff]  ;;  %v37_v28 = vld [vmem:[%s1149_s0 + $0x40] sm:$0xff]  ;;  %s949_s26 = smov [#allocation3]  }
   0xe   :  { %773 = vmatmul.mubr.msk.f32.vlgmr.msra.gmra.mrb[0].mxu1 %vm72_vm0, %v46_v12  ;;  %v51_v26 = vmax.f32 %v35_v24, 0.0  ;;  %v52_v29 = vmax.f32 %v36_v27, 0.0  ;;  %v53_v30 = vmax.f32 %v37_v28, 0.0  ;;  %v38_v31 = vld [vmem:[%s1149_s0 + $0x48] sm:$0xff]  ;;  %v39_v32 = vld [vmem:[%s1149_s0 + $0x50] sm:$0xff]  ;;  %v40_v35 = vld [vmem:[%s1149_s0 + $0x58] sm:$0xff] }
   0xf   :  { %775 = vmatprep.mubr.msk.f32.mxu1 %vm72_vm0, %v47_v16  ;;  %874 = vmatpush3.bf16.msra.mxu1 %v871_v18  ;;  %v54_v33 = vmax.f32 %v38_v31, 0.0  ;;  %v55_v34 = vmax.f32 %v39_v32, 0.0  ;;  %v41_v36 = vld [vmem:[%s1149_s0 + $0x60] sm:$0xff]  ;;  %v56_v37 = vmax.f32 %v40_v35, 0.0  ;;  %v42_v39 = vld [vmem:[%s1149_s0 + $0x68] sm:$0xff]  ;;  %v43_v40 = vld [vmem:[%s1149_s0 + $0x70] sm:$0xff] }
  0x10   :  { %876 = vmatprep.subr.bf16.mxu1 %v875_v20  ;;  %v57_v38 = vmax.f32 %v41_v36, 0.0  ;;  %v58_v41 = vmax.f32 %v42_v39, 0.0  ;;  %v59_v42 = vmax.f32 %v43_v40, 0.0  ;;  %v44_v43 = vld [vmem:[%s1149_s0 + $0x78] sm:$0xff]  ;;  %v655_v45 = vld [vmem:[%s1151_s2] ss:$0 sm:$0xff]  ;;  %vm1106_vm2 = vmpackc.low %vm72_vm0, %vm72_vm0 }
  0x11   :  { %v60_v44 = vmax.f32 %v44_v43, 0.0  ;;  %v947_v31 = vmov 0.0   ;;  %v503_v32 = vld [vmem:[#allocation2] sm:$0x1]  ;;  %s647_s3 = sshll.u32 %s949_s26, 4  ;;  %s648_s3 = int_to_ptr.vmem [resolvable:$true] %s647_s3 }
  0x12   :  { %776 = vmatmul.mubr.msk.f32.gmra.mrb[2].mxu1 %vm72_vm0, %v48_v21  ;;  %860 = vmatprep.mubr.msk.f32.mxu0 %vm946_vm1, %v947_v31  ;;  %s925_s27 = scalar_lea.vmem %s648_s3, 32  ;;  %p926_p1 = scmp.lt.s32.totalorder %s648_s3, %s648_s3 }
  0x13   :  { %778 = vmatprep.mubr.msk.f32.mxu1 %vm72_vm0, %v49_v22  ;;  %878 = vmatpush3.bf16.msra.mxu1 %v875_v20 }
  0x16   :  { %779 = vmatmul.mubr.msk.f32.gmra.mrb[4].mxu1 %vm72_vm0, %v50_v25 }
  0x17   :  { %781 = vmatprep.mubr.msk.f32.mxu1 %vm72_vm0, %v51_v26 }
  0x1a   :  { %782 = vmatmul.mubr.msk.f32.gmra.mrb[6].mxu1 %vm72_vm0, %v52_v29 }
  0x1b   :  { %784 = vmatprep.mubr.msk.f32.mxu1 %vm72_vm0, %v53_v30  ;;  %v945_v30 = vmov 0.0|0.0  }
  0x1c   :  { %879 = vmatprep.subr.bf16.mxu0 %v945_v30 }
  0x1e   :  { %785 = vmatmul.mubr.msk.f32.gmra.mrb[8].mxu1 %vm72_vm0, %v54_v33  ;;  %v948_v33 = vmov 0  }
  0x1f   :  { %787 = vmatprep.mubr.msk.f32.mxu1 %vm72_vm0, %v55_v34  ;;  %916 = vset.pattern.permute.xlu0 %v948_v33  ;;  %v672_v34 = vld [vmem:[%s1153_s4] ss:$0 sm:$0xff] }
  0x20   :  { %506 = vperm.xlu0 %916, %v503_v32  }
  0x22   :  { %788 = vmatmul.mubr.msk.f32.gmra.mrb[10].mxu1 %vm72_vm0, %v56_v37 }
  0x23   :  { %790 = vmatprep.mubr.msk.f32.mxu1 %vm72_vm0, %v57_v38 }
  0x26   :  { %791 = vmatmul.mubr.msk.f32.gmra.mrb[12].mxu1 %vm72_vm0, %v58_v41 }
  0x27   :  { %793 = vmatprep.mubr.msk.f32.mxu1 %vm72_vm0, %v59_v42 }
  0x2a   :  { %794 = vmatmul.mubr.msk.f32.gmra.mrb[14].mxu1 %vm72_vm0, %v60_v44 }
  0x9f   :  { %v507_v33 = vpop.permute.xlu0 %506 }
  0xe1   :  { %v774_v46 = vpop.f32.mrb[0].mxu1 }
  0xe2   :  { %v193_v47 = vadd.f32 %v774_v46, %v655_v45  ;;  %v187_v48 = vpop.f32.mrb[1].mxu1 }
  0xe3   :  { %v188_v49 = vadd.f32 %v655_v45, %v187_v48 }
  0xe4   :  { %v267_v52 = vmax.f32 %v193_v47, 0.0 }
  0xe5   :  { %v266_v50 = vmax.f32 %v188_v49, 0.0  ;;  %v777_v51 = vpop.f32.mrb[2].mxu1 }
  0xe6   :  { %v203_v53 = vadd.f32 %v777_v51, %v655_v45  ;;  %v197_v54 = vpop.f32.mrb[3].mxu1 }
  0xe7   :  { %v198_v55 = vadd.f32 %v655_v45, %v197_v54  ;;  %804 = vmatprep.mubr.msk.f32.mxu1 %vm72_vm0, %v266_v50 }
  0xe8   :  { %v269_v56 = vmax.f32 %v203_v53, 0.0  ;;  %805 = vmatmul.mubr.msk.f32.vlgmr.msra.gmra.mrb[16].mxu1 %vm72_vm0, %v267_v52 }
  0xe9   :  { %v268_v57 = vmax.f32 %v198_v55, 0.0  ;;  %v780_v58 = vpop.f32.mrb[4].mxu1 }
  0xea   :  { %v213_v59 = vadd.f32 %v780_v58, %v655_v45  ;;  %v207_v60 = vpop.f32.mrb[5].mxu1 }
  0xeb   :  { %807 = vmatprep.mubr.msk.f32.mxu1 %vm72_vm0, %v268_v57  ;;  %v208_v61 = vadd.f32 %v655_v45, %v207_v60 }
  0xec   :  { %808 = vmatmul.mubr.msk.f32.gmra.mrb[18].mxu1 %vm72_vm0, %v269_v56  ;;  %v271_v62 = vmax.f32 %v213_v59, 0.0 }
  0xed   :  { %v270_v63 = vmax.f32 %v208_v61, 0.0  ;;  %v783_v0 = vpop.f32.mrb[6].mxu1 }
  0xee   :  { %v223_v1 = vadd.f32 %v783_v0, %v655_v45  ;;  %v217_v2 = vpop.f32.mrb[7].mxu1 }
  0xef   :  { %810 = vmatprep.mubr.msk.f32.mxu1 %vm72_vm0, %v270_v63  ;;  %v218_v3 = vadd.f32 %v655_v45, %v217_v2 }
  0xf0   :  { %811 = vmatmul.mubr.msk.f32.gmra.mrb[20].mxu1 %vm72_vm0, %v271_v62  ;;  %v273_v4 = vmax.f32 %v223_v1, 0.0 }
  0xf1   :  { %v272_v5 = vmax.f32 %v218_v3, 0.0  ;;  %v786_v6 = vpop.f32.mrb[8].mxu1 }
  0xf2   :  { %v233_v7 = vadd.f32 %v786_v6, %v655_v45  ;;  %v227_v8 = vpop.f32.mrb[9].mxu1 }
  0xf3   :  { %813 = vmatprep.mubr.msk.f32.mxu1 %vm72_vm0, %v272_v5  ;;  %v228_v9 = vadd.f32 %v655_v45, %v227_v8 }
  0xf4   :  { %814 = vmatmul.mubr.msk.f32.gmra.mrb[22].mxu1 %vm72_vm0, %v273_v4  ;;  %v275_v10 = vmax.f32 %v233_v7, 0.0 }
  0xf5   :  { %v274_v11 = vmax.f32 %v228_v9, 0.0  ;;  %v789_v12 = vpop.f32.mrb[10].mxu1 }
  0xf6   :  { %v243_v13 = vadd.f32 %v789_v12, %v655_v45  ;;  %v237_v14 = vpop.f32.mrb[11].mxu1 }
  0xf7   :  { %816 = vmatprep.mubr.msk.f32.mxu1 %vm72_vm0, %v274_v11  ;;  %v238_v15 = vadd.f32 %v655_v45, %v237_v14 }
  0xf8   :  { %817 = vmatmul.mubr.msk.f32.gmra.mrb[24].mxu1 %vm72_vm0, %v275_v10  ;;  %v277_v16 = vmax.f32 %v243_v13, 0.0 }
  0xf9   :  { %v276_v17 = vmax.f32 %v238_v15, 0.0  ;;  %v792_v18 = vpop.f32.mrb[12].mxu1 }
  0xfa   :  { %v253_v19 = vadd.f32 %v792_v18, %v655_v45  ;;  %v247_v20 = vpop.f32.mrb[13].mxu1 }
  0xfb   :  { %819 = vmatprep.mubr.msk.f32.mxu1 %vm72_vm0, %v276_v17  ;;  %v248_v21 = vadd.f32 %v655_v45, %v247_v20 }
  0xfc   :  { %820 = vmatmul.mubr.msk.f32.gmra.mrb[26].mxu1 %vm72_vm0, %v277_v16  ;;  %v279_v22 = vmax.f32 %v253_v19, 0.0 }
  0xfd   :  { %v278_v23 = vmax.f32 %v248_v21, 0.0  ;;  %v795_v24 = vpop.f32.mrb[14].mxu1 }
  0xfe   :  { %v263_v25 = vadd.f32 %v795_v24, %v655_v45  ;;  %v257_v26 = vpop.f32.mrb[15].mxu1 }
  0xff   :  { %822 = vmatprep.mubr.msk.f32.mxu1 %vm72_vm0, %v278_v23  ;;  %v258_v27 = vadd.f32 %v655_v45, %v257_v26 }
 0x100   :  { %823 = vmatmul.mubr.msk.f32.gmra.mrb[28].mxu1 %vm72_vm0, %v279_v22  ;;  %v281_v28 = vmax.f32 %v263_v25, 0.0 }
 0x101   :  { %v280_v29 = vmax.f32 %v258_v27, 0.0 }
 0x103   :  { %825 = vmatprep.mubr.msk.f32.mxu1 %vm72_vm0, %v280_v29  ;;  %v509_v29 = vlaneseq }
 0x104   :  { %826 = vmatmul.mubr.msk.f32.gmra.mrb[30].mxu1 %vm72_vm0, %v281_v28  ;;  %v502_v28 = vld [vmem:[%s1154_s5] sm:$0x1]  ;;  %s921_s5 = scalar_lea.vmem %s648_s3, 16 }
 0x105   :  { %v510_v31 = vshrl.u32 %v509_v29, 7  ;;  %p922_p0 = scmp.ne.s32.totalorder %s648_s3, %s921_s5  ;;  %p927_p2 = scmp.lt.s32.totalorder %s925_s27, %s921_s5 }
 0x107   :  { %v511_v32 = vsub.s32 0, %v510_v31  ;;  %p928_p3 = por %p927_p2, %p926_p1 }
 0x109   :  { %p929_p4 = pnand %p928_p3, %p922_p0 }
 0x1bb   :  { %v806_v35 = vpop.f32.mrb[16].mxu1 }
 0x1bc   :  { %v413_v36 = vadd.f32 %v806_v35, %v672_v34  ;;  %v407_v37 = vpop.f32.mrb[17].mxu1 }
 0x1bd   :  { %v408_v38 = vadd.f32 %v672_v34, %v407_v37 }
 0x1be   :  { %v487_v39 = vmax.f32 %v413_v36, 0.0 }
 0x1bf   :  { %v486_v40 = vmax.f32 %v408_v38, 0.0  ;;  %v809_v41 = vpop.f32.mrb[18].mxu1 }
 0x1c0   :  { %v423_v42 = vadd.f32 %v809_v41, %v672_v34  ;;  %v417_v43 = vpop.f32.mrb[19].mxu1 }
 0x1c1   :  { %v880_v45 = vpack.c.bf16 %v487_v39, %v486_v40  ;;  %v418_v46 = vadd.f32 %v672_v34, %v417_v43 }
 0x1c2   :  { %v489_v47 = vmax.f32 %v423_v42, 0.0 }
 0x1c3   :  { %v488_v48 = vmax.f32 %v418_v46, 0.0  ;;  %882 = vmatpush3.bf16.xpose.msk.msra.mxu0 %vm1106_vm2, %v880_v45  ;;  %v812_v49 = vpop.f32.mrb[20].mxu1 }
 0x1c4   :  { %v433_v50 = vadd.f32 %v812_v49, %v672_v34  ;;  %v427_v51 = vpop.f32.mrb[21].mxu1  ;;  %883 = vmatprep.subr.bf16.mxu0 %v945_v30 }
 0x1c5   :  { %v884_v52 = vpack.c.bf16 %v489_v47, %v488_v48  ;;  %v428_v53 = vadd.f32 %v672_v34, %v427_v51 }
 0x1c6   :  { %v491_v54 = vmax.f32 %v433_v50, 0.0 }
 0x1c7   :  { %v490_v55 = vmax.f32 %v428_v53, 0.0  ;;  %v815_v56 = vpop.f32.mrb[22].mxu1 }
 0x1c8   :  { %v443_v57 = vadd.f32 %v815_v56, %v672_v34  ;;  %v437_v58 = vpop.f32.mrb[23].mxu1 }
 0x1c9   :  { %v888_v59 = vpack.c.bf16 %v491_v54, %v490_v55  ;;  %v438_v60 = vadd.f32 %v672_v34, %v437_v58 }
 0x1ca   :  { %v493_v61 = vmax.f32 %v443_v57, 0.0 }
 0x1cb   :  { %886 = vmatpush3.bf16.xpose.msk.msra.mxu0 %vm1106_vm2, %v884_v52  ;;  %v492_v62 = vmax.f32 %v438_v60, 0.0  ;;  %v818_v63 = vpop.f32.mrb[24].mxu1 }
 0x1cc   :  { %887 = vmatprep.subr.bf16.mxu0 %v945_v30  ;;  %v453_v0 = vadd.f32 %v818_v63, %v672_v34  ;;  %v447_v1 = vpop.f32.mrb[25].mxu1 }
 0x1cd   :  { %v892_v2 = vpack.c.bf16 %v493_v61, %v492_v62  ;;  %v448_v3 = vadd.f32 %v672_v34, %v447_v1 }
 0x1ce   :  { %v495_v4 = vmax.f32 %v453_v0, 0.0 }
 0x1cf   :  { %v494_v5 = vmax.f32 %v448_v3, 0.0  ;;  %v821_v6 = vpop.f32.mrb[26].mxu1 }
 0x1d0   :  { %v463_v7 = vadd.f32 %v821_v6, %v672_v34  ;;  %v457_v8 = vpop.f32.mrb[27].mxu1 }
 0x1d1   :  { %v896_v9 = vpack.c.bf16 %v495_v4, %v494_v5  ;;  %v458_v10 = vadd.f32 %v672_v34, %v457_v8 }
 0x1d2   :  { %v497_v11 = vmax.f32 %v463_v7, 0.0 }
 0x1d3   :  { %890 = vmatpush3.bf16.xpose.msk.msra.mxu0 %vm1106_vm2, %v888_v59  ;;  %v496_v12 = vmax.f32 %v458_v10, 0.0  ;;  %v824_v13 = vpop.f32.mrb[28].mxu1 }
 0x1d4   :  { %891 = vmatprep.subr.bf16.mxu0 %v945_v30  ;;  %v473_v14 = vadd.f32 %v824_v13, %v672_v34  ;;  %v467_v15 = vpop.f32.mrb[29].mxu1 }
 0x1d5   :  { %v900_v16 = vpack.c.bf16 %v497_v11, %v496_v12  ;;  %v468_v17 = vadd.f32 %v672_v34, %v467_v15 }
 0x1d6   :  { %v499_v18 = vmax.f32 %v473_v14, 0.0 }
 0x1d7   :  { %v498_v19 = vmax.f32 %v468_v17, 0.0  ;;  %v827_v20 = vpop.f32.mrb[30].mxu1 }
 0x1d8   :  { %v483_v21 = vadd.f32 %v827_v20, %v672_v34  ;;  %v477_v22 = vpop.f32.mrb[31].mxu1 }
 0x1d9   :  { %v904_v23 = vpack.c.bf16 %v499_v18, %v498_v19  ;;  %v478_v24 = vadd.f32 %v672_v34, %v477_v22  ;;  %v512_v34 = vrot.slane %v507_v33, %v511_v32 }
 0x1da   :  { %v501_v25 = vmax.f32 %v483_v21, 0.0 }
 0x1db   :  { %894 = vmatpush3.bf16.xpose.msk.msra.mxu0 %vm1106_vm2, %v892_v2  ;;  %v500_v26 = vmax.f32 %v478_v24, 0.0 }
 0x1dc   :  { %895 = vmatprep.subr.bf16.mxu0 %v945_v30 }
 0x1dd   :  { %v908_v27 = vpack.c.bf16 %v501_v25, %v500_v26 }
 0x1e3   :  { %898 = vmatpush3.bf16.xpose.msk.msra.mxu0 %vm1106_vm2, %v896_v9 }
 0x1e4   :  { %899 = vmatprep.subr.bf16.mxu0 %v945_v30 }
 0x1eb   :  { %902 = vmatpush3.bf16.xpose.msk.msra.mxu0 %vm1106_vm2, %v900_v16 }
 0x1ec   :  { %903 = vmatprep.subr.bf16.mxu0 %v945_v30 }
 0x1f3   :  { %906 = vmatpush3.bf16.xpose.msk.msra.mxu0 %vm1106_vm2, %v904_v23 }
 0x1f4   :  { %907 = vmatprep.subr.bf16.mxu0 %v945_v30 }
 0x1fb   :  { %910 = vmatpush3.bf16.xpose.msk.msra.mxu0 %vm1106_vm2, %v908_v27 }
 0x202   :  { %861 = vmatmul.mubr.msk.f32.vlgmr.msra.gmra.mrb[0].mxu0 %vm72_vm0, %v502_v28 }
 0x2d5   :  { %v630_v35 = vpop.f32.mrb[0].mxu0 }
 0x2d6   :  { %v631_v36 = vadd.f32 %v630_v35, %v512_v34  ;;  %v862_v37 = vpop.f32.mrb[1].mxu0 }
 0x2d8   :  { %v706_v38 = vmul.f32 -1.442695, %v631_v36 }
 0x2da   :  { %917 = vpow2.f32 %v706_v38 }
 0x2e4   :  { %v918_v30 = vpop.eup %917 }
 0x2e5   :  { %v637_v39 = vadd.f32 1.0, %v918_v30 }
 0x2e7   :  { %919 = vrcp.f32 %v637_v39 }
 0x2f1   :  { %v920_v40 = vpop.eup %919 }
 0x2f2   :  { %640 = vst [vmem:[#allocation3] sm:$0x1] %v920_v40 }
 0x2f3   :  { %932 = shalt.err (!%p929_p4)
}
 0x2f4   :  { %s933_s30 = scalar_lea.hbm %s1156_s7, 16 }
 0x2f5   :  { %p934_p5 = scmp.ne.s32.totalorder %s1156_s7, %s933_s30  ;;  %p937_p6 = scmp.lt.u32.totalorder %s933_s30, %s1156_s7 }
 0x2f7   :  { %p939_p7 = pnand %p937_p6, %p934_p5 }
 0x2f9   :  { %942 = shalt.err (!%p939_p7)
}
 0x2fa   :  { %650 = dma.vmem_to_hbm [thread:$0]  %s648_s3, 16, %s1156_s7, [#allocation4]  }
 0x2fb   :  { %943 = dma.done.wait [#allocation4], 16  }
 0x2fc   :  { %944 = vsyncadd [#allocation4], 4294967280 }
 0x2fd   :  { %654 = vsyncpa [#allocation4], 1 }

</bundles_post_ra>
